<compile_context>
chip_gen: v7x
topology: tpu7x:2x2x1
jax: 0.10.0
libtpu: 0.0.40
codegen_flags: <defaults>
</compile_context>

<pallas_src>
import jax
import jax.numpy as jnp
from jax.experimental import pallas as pl
from jax.experimental.pallas import tpu as pltpu

NUM_SUITS = 9
NUM_IN_SUIT = 6
N_PLAYERS = 6
HIDDEN_DIM = 64
HIDDEN_PAD = 128                       # lane-dense hidden width

ASK_IN_DIM = 3 * N_PLAYERS // 2 * NUM_IN_SUIT * NUM_SUITS + N_PLAYERS            # 492
DECLARE_IN_DIM = (N_PLAYERS * NUM_IN_SUIT * NUM_SUITS + N_PLAYERS
                  + NUM_SUITS + N_PLAYERS // 2 * NUM_IN_SUIT)                     # 357

_TM = 256                 # rows per grid step when batching large move sets
_SMALL_BATCH_MAX = 512    # up to this many (padded) rows: single un-gridded call


def _round_up(x, n):
    return -(-x // n) * n


def _bucket_batch(m):
    """Pad batch to a small set of fixed sizes to avoid recompiles per move count."""
    m = max(int(m), 1)
    if m <= _SMALL_BATCH_MAX:
        return max(8, _round_up(m, 8))
    return _round_up(m, _TM)


def _mlp_kernel(x_ref, w1_ref, b1_ref, w2_ref, b2_ref, w3_ref, b3_ref, o_ref):
    # Layers 1/2 on the MXU: bf16 operands, f32 accumulation. Bias add + ReLU in
    # f32 on the VPU (keeps v5e happy, negligible cost).
    h = jnp.dot(x_ref[...], w1_ref[...],
                preferred_element_type=jnp.float32) + b1_ref[...]
    h = jnp.maximum(h, 0.0)
    h = jnp.dot(h.astype(jnp.bfloat16), w2_ref[...],
                preferred_element_type=jnp.float32) + b2_ref[...]
    h = jnp.maximum(h, 0.0)
    # Final Linear(hidden, 1): an N=1 MXU matmul is lane-sparse; do it as a VPU
    # multiply + lane (XLU) reduction instead.
    o_ref[...] = jnp.sum(h * w3_ref[...], axis=-1, keepdims=True) + b3_ref[...]


@jax.jit
def _mlp_forward(x, w1, b1, w2, b2, w3, b3):
    m, k = x.shape
    hidden = w1.shape[1]
    flops = 2 * m * (k * hidden + hidden * hidden + hidden)
    bytes_accessed = (x.size * 2 + w1.size * 2 + w2.size * 2
                      + (b1.size + b2.size + w3.size + b3.size) * 4 + m * 4)
    cost = pl.CostEstimate(flops=int(flops), transcendentals=0,
                           bytes_accessed=int(bytes_accessed))

    if m <= _SMALL_BATCH_MAX:
        # Whole problem fits trivially in VMEM; single invocation, no grid
        # (a grid would only add ~0.35 us/step of pure overhead here).
        vmem = pl.BlockSpec(memory_space=pltpu.MemorySpace.VMEM)
        return pl.pallas_call(
            _mlp_kernel,
            out_shape=jax.ShapeDtypeStruct((m, 1), jnp.float32),
            in_specs=[vmem] * 7,
            out_specs=vmem,
            cost_estimate=cost,
        )(x, w1, b1, w2, b2, w3, b3)

    # Large batch: 1-D grid over rows only. Weights use a constant block index so
    # they stay VMEM-resident across steps; "parallel" lets v7x shard the batch
    # across its two TensorCores.
    def full(arr):
        return pl.BlockSpec(arr.shape, lambda i: (0,) * arr.ndim)

    return pl.pallas_call(
        _mlp_kernel,
        out_shape=jax.ShapeDtypeStruct((m, 1), jnp.float32),
        grid=(m // _TM,),
        in_specs=[pl.BlockSpec((_TM, k), lambda i: (i, 0)),
                  full(w1), full(b1), full(w2), full(b2), full(w3), full(b3)],
        out_specs=pl.BlockSpec((_TM, 1), lambda i: (i, 0)),
        compiler_params=pltpu.CompilerParams(dimension_semantics=("parallel",)),
        cost_estimate=cost,
    )(x, w1, b1, w2, b2, w3, b3)


def _init_linear(key, fan_in, fan_out):
    # Deterministic stand-in for torch.nn.Linear default init: U(-1/sqrt(fan_in), +).
    kw, kb = jax.random.split(key)
    bound = 1.0 / (fan_in ** 0.5)
    w = jax.random.uniform(kw, (fan_in, fan_out), jnp.float32, -bound, bound)
    b = jax.random.uniform(kb, (1, fan_out), jnp.float32, -bound, bound)
    return w, b


def _pack_head(key, in_dim, hidden):
    """Init one 3-layer head; return (padded/bf16 kernel params, raw f32 params)."""
    k1, k2, k3 = jax.random.split(key, 3)
    w1, b1 = _init_linear(k1, in_dim, hidden)
    w2, b2 = _init_linear(k2, hidden, hidden)
    w3, b3 = _init_linear(k3, hidden, 1)

    in_pad = _round_up(in_dim, 128)
    # Zero-padding rows/cols is numerically exact (padded inputs are zero, padded
    # hidden units get bias 0 -> ReLU(0) = 0 -> contribute nothing downstream).
    w1p = jnp.zeros((in_pad, HIDDEN_PAD), jnp.float32).at[:in_dim, :hidden].set(w1)
    b1p = jnp.zeros((1, HIDDEN_PAD), jnp.float32).at[:, :hidden].set(b1)
    w2p = jnp.zeros((HIDDEN_PAD, HIDDEN_PAD), jnp.float32).at[:hidden, :hidden].set(w2)
    b2p = jnp.zeros((1, HIDDEN_PAD), jnp.float32).at[:, :hidden].set(b2)
    w3p = jnp.zeros((1, HIDDEN_PAD), jnp.float32).at[:, :hidden].set(w3[:, 0])

    packed = (w1p.astype(jnp.bfloat16), b1p,
              w2p.astype(jnp.bfloat16), b2p,
              w3p, b3)
    raw = (w1, b1, w2, b2, w3, b3)
    return packed, raw


class MoveEvalPallas:
    """Pallas implementation of MoveEval.forward (the ask/declare MLP heads)."""

    def __init__(self, key, hidden_dim=HIDDEN_DIM, n_players=N_PLAYERS):
        self.hidden_dim = hidden_dim
        self.n_players = n_players
        self.ask_in = 3 * n_players // 2 * NUM_IN_SUIT * NUM_SUITS + n_players
        self.declare_in = (n_players * NUM_IN_SUIT * NUM_SUITS + n_players
                           + NUM_SUITS + n_players // 2 * NUM_IN_SUIT)
        k_ask, k_dec = jax.random.split(key)
        self.ask_params, self.ask_params_f32 = _pack_head(k_ask, self.ask_in, hidden_dim)
        self.declare_params, self.declare_params_f32 = _pack_head(
            k_dec, self.declare_in, hidden_dim)
        # TODO(synk): game-playing helpers (ask/declare/generate_embedding) depend on
        # external game state / globals and are outside the forward hot path.

    def __call__(self, move, type="ask"):
        if type == "ask":
            params, in_dim = self.ask_params, self.ask_in
        elif type == "declare":
            params, in_dim = self.declare_params, self.declare_in
        else:
            raise ValueError(type)
        w1, b1, w2, b2, w3, b3 = params
        x = jnp.asarray(move, jnp.float32)
        m, k = x.shape
        assert k == in_dim, (k, in_dim)
        m_pad = _bucket_batch(m)
        k_pad = w1.shape[0]
        # Pad batch (bucketed) and contraction dim with zeros; cast to bf16 so the
        # activation DMA matches the bf16 MXU operand width.
        x = jnp.pad(x, ((0, m_pad - m), (0, k_pad - k))).astype(jnp.bfloat16)
        out = _mlp_forward(x, w1, b1, w2, b2, w3, b3)
        return out[:m]


def _reference_bf16(move, packed, in_dim):
    """Pure-JAX reference with the same bf16-operand / padding scheme as the kernel."""
    w1, b1, w2, b2, w3, b3 = packed
    x = jnp.asarray(move, jnp.float32)
    xp = jnp.pad(x, ((0, 0), (0, w1.shape[0] - in_dim))).astype(jnp.bfloat16)
    h = jnp.maximum(jnp.dot(xp, w1, preferred_element_type=jnp.float32) + b1, 0.0)
    h = jnp.maximum(jnp.dot(h.astype(jnp.bfloat16), w2,
                            preferred_element_type=jnp.float32) + b2, 0.0)
    return jnp.sum(h * w3, axis=-1, keepdims=True) + b3


def _reference_f32(move, raw):
    """Full-precision reference (un-padded f32 weights), matches the torch module."""
    w1, b1, w2, b2, w3, b3 = raw
    h = jnp.maximum(move @ w1 + b1, 0.0)
    h = jnp.maximum(h @ w2 + b2, 0.0)
    return h @ w3 + b3


if __name__ == "__main__":
    key = jax.random.PRNGKey(0)
    k_model, k_ask, k_dec, k_big = jax.random.split(key, 4)

    model = MoveEvalPallas(k_model)

    # Small batches (odd count exercises batch bucketing/padding).
    m_ask, m_dec = 5, 8
    ask_moves = jax.random.normal(k_ask, (m_ask, ASK_IN_DIM), jnp.float32)
    declare_moves = jax.random.normal(k_dec, (m_dec, DECLARE_IN_DIM), jnp.float32)

    ask_scores = jax.block_until_ready(model(ask_moves, "ask"))
    declare_scores = jax.block_until_ready(model(declare_moves, "declare"))
    assert ask_scores.shape == (m_ask, 1) and declare_scores.shape == (m_dec, 1)

    # Kernel vs bf16-operand reference (tight): validates kernel structure/padding.
    ref_ask_bf = _reference_bf16(ask_moves, model.ask_params, model.ask_in)
    ref_dec_bf = _reference_bf16(declare_moves, model.declare_params, model.declare_in)
    assert jnp.allclose(ask_scores, ref_ask_bf, atol=2e-3, rtol=2e-3)
    assert jnp.allclose(declare_scores, ref_dec_bf, atol=2e-3, rtol=2e-3)

    # Kernel vs full-f32 reference (loose): bf16 weights are an accepted approximation.
    ref_ask_f32 = _reference_f32(ask_moves, model.ask_params_f32)
    ref_dec_f32 = _reference_f32(declare_moves, model.declare_params_f32)
    assert jnp.allclose(ask_scores, ref_ask_f32, atol=3e-2, rtol=3e-2)
    assert jnp.allclose(declare_scores, ref_dec_f32, atol=3e-2, rtol=3e-2)

    # Larger batch exercises the gridded (batch-parallel) path.
    m_big = 600
    big_moves = jax.random.normal(k_big, (m_big, ASK_IN_DIM), jnp.float32)
    big_scores = jax.block_until_ready(model(big_moves, "ask"))
    assert big_scores.shape == (m_big, 1)
    ref_big_bf = _reference_bf16(big_moves, model.ask_params, model.ask_in)
    assert jnp.allclose(big_scores, ref_big_bf, atol=2e-3, rtol=2e-3)

    print("KERNEL_OK")
</pallas_src>

<mosaic_0001>
module attributes {stable_mosaic.version = 11 : i64} {
  func.func @_mlp_kernel(%arg0: memref<8x512xbf16, #tpu.memory_space<vmem>>, %arg1: memref<512x128xbf16, #tpu.memory_space<vmem>>, %arg2: memref<1x128xf32, #tpu.memory_space<vmem>>, %arg3: memref<128x128xbf16, #tpu.memory_space<vmem>>, %arg4: memref<1x128xf32, #tpu.memory_space<vmem>>, %arg5: memref<1x128xf32, #tpu.memory_space<vmem>>, %arg6: memref<1x1xf32, #tpu.memory_space<vmem>>, %arg7: memref<8x1xf32, #tpu.memory_space<vmem>>) attributes {dimension_semantics = [], scalar_prefetch = 0 : i64, scratch_operands = 0 : i64, tpu.core_type = #tpu.core_type<tc>} {
    %c0 = arith.constant 0 : index
    %c0_0 = arith.constant 0 : index
    %0 = vector.load %arg0[%c0, %c0_0] : memref<8x512xbf16, #tpu.memory_space<vmem>>, vector<8x512xbf16>
    %c0_1 = arith.constant 0 : index
    %c0_2 = arith.constant 0 : index
    %1 = vector.load %arg1[%c0_1, %c0_2] : memref<512x128xbf16, #tpu.memory_space<vmem>>, vector<512x128xbf16>
    %cst = arith.constant dense<0.000000e+00> : vector<8x128xf32>
    %2 = tpu.matmul %0, %1, %cst {dimension_numbers = #tpu.dot_dimension_numbers<[1], [0], [0], [1], [0, 0, 1, 1], [], []>} : vector<8x512xbf16>, vector<512x128xbf16>, vector<8x128xf32> -> vector<8x128xf32>
    %c0_3 = arith.constant 0 : index
    %c0_4 = arith.constant 0 : index
    %3 = vector.load %arg2[%c0_3, %c0_4] : memref<1x128xf32, #tpu.memory_space<vmem>>, vector<1x128xf32>
    %4 = vector.broadcast %3 : vector<1x128xf32> to vector<8x128xf32>
    %5 = arith.addf %2, %4 : vector<8x128xf32>
    %cst_5 = arith.constant 0.000000e+00 : f32
    %6 = vector.broadcast %cst_5 : f32 to vector<8x128xf32>
    %7 = arith.maximumf %5, %6 : vector<8x128xf32>
    %8 = arith.truncf %7 : vector<8x128xf32> to vector<8x128xbf16>
    %c0_6 = arith.constant 0 : index
    %c0_7 = arith.constant 0 : index
    %9 = vector.load %arg3[%c0_6, %c0_7] : memref<128x128xbf16, #tpu.memory_space<vmem>>, vector<128x128xbf16>
    %cst_8 = arith.constant dense<0.000000e+00> : vector<8x128xf32>
    %10 = tpu.matmul %8, %9, %cst_8 {dimension_numbers = #tpu.dot_dimension_numbers<[1], [0], [0], [1], [0, 0, 1, 1], [], []>} : vector<8x128xbf16>, vector<128x128xbf16>, vector<8x128xf32> -> vector<8x128xf32>
    %c0_9 = arith.constant 0 : index
    %c0_10 = arith.constant 0 : index
    %11 = vector.load %arg4[%c0_9, %c0_10] : memref<1x128xf32, #tpu.memory_space<vmem>>, vector<1x128xf32>
    %12 = vector.broadcast %11 : vector<1x128xf32> to vector<8x128xf32>
    %13 = arith.addf %10, %12 : vector<8x128xf32>
    %cst_11 = arith.constant 0.000000e+00 : f32
    %14 = vector.broadcast %cst_11 : f32 to vector<8x128xf32>
    %15 = arith.maximumf %13, %14 : vector<8x128xf32>
    %c0_12 = arith.constant 0 : index
    %c0_13 = arith.constant 0 : index
    %16 = vector.load %arg5[%c0_12, %c0_13] : memref<1x128xf32, #tpu.memory_space<vmem>>, vector<1x128xf32>
    %17 = vector.broadcast %16 : vector<1x128xf32> to vector<8x128xf32>
    %18 = arith.mulf %15, %17 : vector<8x128xf32>
    %cst_14 = arith.constant dense<0.000000e+00> : vector<8xf32>
    %19 = vector.multi_reduction <add>, %18, %cst_14 [1] : vector<8x128xf32> to vector<8xf32>
    %20 = vector.shape_cast %19 : vector<8xf32> to vector<8x1xf32>
    %c0_15 = arith.constant 0 : index
    %c0_16 = arith.constant 0 : index
    %21 = vector.load %arg6[%c0_15, %c0_16] : memref<1x1xf32, #tpu.memory_space<vmem>>, vector<1x1xf32>
    %22 = vector.broadcast %21 : vector<1x1xf32> to vector<8x1xf32>
    %23 = arith.addf %20, %22 : vector<8x1xf32>
    %c0_17 = arith.constant 0 : index
    %c0_18 = arith.constant 0 : index
    %24 = vector.load %arg7[%c0_17, %c0_18] : memref<8x1xf32, #tpu.memory_space<vmem>>, vector<8x1xf32>
    tpu.vector_store %arg7[%c0_17, %c0_18], %23 {strides = array<i32>} : memref<8x1xf32, #tpu.memory_space<vmem>>, vector<8x1xf32>,
    return
  }
}

</mosaic_0001>

<bundles_post_ra>
// kernel: _mlp_forward.1
= control target key start
LH: loop header
LB: loop body
LE: loop exit
PB: predicated region body
PF: predicated region fallthrough
CT: control target
= control target key end

     0   :  { %s913_s0 = inlined_call_operand.hbm [shape: bf16[8,512], index: 0, kind: input, shape index: {}]   ;;  %s914_s1 = inlined_call_operand.hbm [shape: bf16[512,128], index: 1, kind: input, shape index: {}]   ;;  %s915_s2 = inlined_call_operand.vmem [shape: f32[1,128], index: 2, kind: input, shape index: {}]   ;;  %s916_s3 = inlined_call_operand.hbm [shape: bf16[128,128], index: 3, kind: input, shape index: {}]   ;;  %s917_s4 = inlined_call_operand.vmem [shape: f32[1,128], index: 4, kind: input, shape index: {}]   ;;  %s918_s5 = inlined_call_operand.vmem [shape: f32[1,128], index: 5, kind: input, shape index: {}]   ;;  %s919_s6 = inlined_call_operand.<no memory space> [shape: f32[1,1], index: 6, kind: input, shape index: {}]   ;;  %s920_s7 = inlined_call_operand.vmem [shape: f32[8,1], index: 7, kind: output, shape index: {}]  }
   0x1   :  { %v12_v0 = vstv %s919_s6 }
   0x2   :  { %13 = vst [vmem:[#allocation2] sm:$0x1] %v12_v0 }
   0x3   :  { %14 = vsyncpa [#allocation4], 0 }
   0x4   :  { %15 = vsyncpa [#allocation6], 0  ;;  %s809_s26 = smov [#allocation5]   ;;  %s739_s30 = scalar_lea.hbm %s914_s1, 4096 }
   0x5   :  { %s31_s27 = sshll.u32 %s809_s26, 4  ;;  %p740_p0 = scmp.ne.s32.totalorder %s914_s1, %s739_s30  ;;  %s32_s27 = int_to_ptr.vmem [resolvable:$true] %s31_s27 }
   0x6   :  { %p743_p1 = scmp.lt.u32.totalorder %s739_s30, %s914_s1 }
   0x8   :  { %p745_p2 = pnand %p743_p1, %p740_p0 }
   0xa   :  { %748 = shalt.err (!%p745_p2)
}
   0xb   :  { %s749_s6 = scalar_lea.vmem %s32_s27, 4096  ;;  %p754_p4 = scmp.lt.s32.totalorder %s32_s27, %s32_s27 }
   0xc   :  { %p750_p3 = scmp.ne.s32.totalorder %s32_s27, %s749_s6  ;;  %p755_p5 = scmp.lt.s32.totalorder %s749_s6, %s749_s6 }
   0xe   :  { %p756_p6 = por %p755_p5, %p754_p4 }
  0x10   :  { %p757_p7 = pnand %p756_p6, %p750_p3 }
  0x12   :  { %760 = shalt.err (!%p757_p7)
}
  0x13   :  { %s810_s12 = smov 64   ;;  %s811_s13 = smov 4  }
  0x14   :  { %37 = dma.hbm_to_vmem [thread:$0]  %s914_s1, 4096, %s32_s27, [#allocation6], %s810_s12, %s810_s12, %s811_s13  }
  0x15   :  { %s812_s16 = smov [#allocation3]   ;;  %s813_s18 = smov [#allocation7]  }
  0x16   :  { %s22_s17 = sshll.u32 %s812_s16, 4  ;;  %s45_s19 = sshll.u32 %s813_s18, 4  ;;  %s23_s17 = int_to_ptr.vmem [resolvable:$true] %s22_s17  ;;  %s46_s19 = int_to_ptr.vmem [resolvable:$true] %s45_s19 }
  0x17   :  { %s761_s22 = scalar_lea.hbm %s913_s0, 256 }
  0x18   :  { %p762_p8 = scmp.ne.s32.totalorder %s913_s0, %s761_s22  ;;  %p765_p9 = scmp.lt.u32.totalorder %s761_s22, %s913_s0 }
  0x1a   :  { %p767_p10 = pnand %p765_p9, %p762_p8 }
  0x1c   :  { %770 = shalt.err (!%p767_p10)
}
  0x1d   :  { %s771_s1 = scalar_lea.vmem %s23_s17, 256  ;;  %p776_p12 = scmp.lt.s32.totalorder %s23_s17, %s23_s17 }
  0x1e   :  { %p772_p11 = scmp.ne.s32.totalorder %s23_s17, %s771_s1  ;;  %p777_p13 = scmp.lt.s32.totalorder %s771_s1, %s771_s1 }
  0x20   :  { %p778_p0 = por %p777_p13, %p776_p12 }
  0x22   :  { %p779_p1 = pnand %p778_p0, %p772_p11 }
  0x24   :  { %782 = shalt.err (!%p779_p1)
}
  0x25   :  { %25 = dma.hbm_to_vmem [thread:$0]  %s913_s0, 256, %s23_s17, [#allocation4]  }
  0x26   :  { %s783_s8 = scalar_lea.hbm %s916_s3, 1024 }
  0x27   :  { %p784_p2 = scmp.ne.s32.totalorder %s916_s3, %s783_s8  ;;  %p787_p3 = scmp.lt.u32.totalorder %s783_s8, %s916_s3 }
  0x29   :  { %p789_p4 = pnand %p787_p3, %p784_p2 }
  0x2b   :  { %792 = shalt.err (!%p789_p4)
}
  0x2c   :  { %s793_s14 = scalar_lea.vmem %s46_s19, 1024  ;;  %p798_p6 = scmp.lt.s32.totalorder %s46_s19, %s46_s19 }
  0x2d   :  { %p794_p5 = scmp.ne.s32.totalorder %s46_s19, %s793_s14  ;;  %p799_p7 = scmp.lt.s32.totalorder %s793_s14, %s793_s14 }
  0x2f   :  { %p800_p8 = por %p799_p7, %p798_p6 }
  0x31   :  { %p801_p9 = pnand %p800_p8, %p794_p5 }
  0x33   :  { %804 = shalt.err (!%p801_p9)
}
  0x34   :  { %51 = dma.hbm_to_vmem [thread:$0]  %s916_s3, 1024, %s46_s19, [#allocation6], %s810_s12, %s810_s12, %s811_s13  }
  0x35   :  { %805 = dma.done.wait [#allocation4], 256  }
  0x36   :  { %806 = vsyncadd [#allocation4], 4294967040 }
  0x37   :  { %807 = dma.done.wait [#allocation6], 5120  }
  0x38   :  { %808 = vsyncadd [#allocation6], 4294962176  ;;  %v695_v1 = vld [vmem:[#allocation5 + $0x40] sm:$0xff]   ;;  %v699_v5 = vld [vmem:[#allocation5 + $0x48] sm:$0xff]   ;;  %v814_v40 = vmov 0.0   ;;  %vm815_vm0 = vmmov 0  }
  0x39   :  { %v696_v2 = vld [vmem:[#allocation5 + $0xc0] sm:$0xff]   ;;  %615 = vmatprep.subr.bf16.mxu0 %v695_v1  ;;  %v700_v6 = vld [vmem:[#allocation5 + $0xc8] sm:$0xff]   ;;  %v703_v9 = vld [vmem:[#allocation5 + $0x50] sm:$0xff]   ;;  %vm559_vm1 = vcmask 7168  }
  0x3a   :  { %v697_v3 = vld [vmem:[#allocation5] sm:$0xff]   ;;  %637 = vmatprep.subr.bf16.mxu1 %v696_v2  ;;  %v701_v7 = vld [vmem:[#allocation5 + $0x8] sm:$0xff]   ;;  %v704_v10 = vld [vmem:[#allocation5 + $0xd0] sm:$0xff]  }
  0x3b   :  { %v698_v4 = vld [vmem:[#allocation5 + $0x80] sm:$0xff]   ;;  %616 = vmatpush3.bf16.msra.mxu0 %v697_v3  ;;  %v702_v8 = vld [vmem:[#allocation5 + $0x88] sm:$0xff]   ;;  %v705_v11 = vld [vmem:[#allocation5 + $0x10] sm:$0xff]  }
  0x3c   :  { %638 = vmatpush3.bf16.msra.mxu1 %v698_v4  ;;  %617 = vmatprep.subr.bf16.mxu0 %v699_v5  ;;  %v706_v12 = vld [vmem:[#allocation5 + $0x90] sm:$0xff]   ;;  %v707_v13 = vld [vmem:[#allocation5 + $0x58] sm:$0xff]   ;;  %v711_v17 = vld [vmem:[#allocation5 + $0x60] sm:$0xff]  }
  0x3d   :  { %639 = vmatprep.subr.bf16.mxu1 %v700_v6  ;;  %v708_v14 = vld [vmem:[#allocation5 + $0xd8] sm:$0xff]   ;;  %v712_v18 = vld [vmem:[#allocation5 + $0xe0] sm:$0xff]   ;;  %v715_v21 = vld [vmem:[#allocation5 + $0x68] sm:$0xff]  }
  0x3e   :  { %v709_v15 = vld [vmem:[#allocation5 + $0x18] sm:$0xff]   ;;  %v713_v19 = vld [vmem:[#allocation5 + $0x20] sm:$0xff]   ;;  %v716_v22 = vld [vmem:[#allocation5 + $0xe8] sm:$0xff]  }
  0x3f   :  { %618 = vmatpush3.bf16.msra.mxu0 %v701_v7  ;;  %v710_v16 = vld [vmem:[#allocation5 + $0x98] sm:$0xff]   ;;  %v714_v20 = vld [vmem:[#allocation5 + $0xa0] sm:$0xff]   ;;  %v717_v23 = vld [vmem:[#allocation5 + $0x28] sm:$0xff]  }
  0x40   :  { %640 = vmatpush3.bf16.msra.mxu1 %v702_v8  ;;  %619 = vmatprep.subr.bf16.mxu0 %v703_v9  ;;  %v718_v24 = vld [vmem:[#allocation5 + $0xa8] sm:$0xff]   ;;  %v719_v25 = vld [vmem:[#allocation5 + $0x70] sm:$0xff]   ;;  %v723_v29 = vld [vmem:[#allocation5 + $0x78] sm:$0xff]  }
  0x41   :  { %641 = vmatprep.subr.bf16.mxu1 %v704_v10  ;;  %v720_v26 = vld [vmem:[#allocation5 + $0xf0] sm:$0xff]   ;;  %v724_v30 = vld [vmem:[#allocation5 + $0xf8] sm:$0xff]   ;;  %v731_v39 = vld [vmem:[#allocation7] sm:$0xff]  }
  0x42   :  { %v721_v27 = vld [vmem:[#allocation5 + $0x30] sm:$0xff]   ;;  %v725_v31 = vld [vmem:[#allocation5 + $0x38] sm:$0xff]   ;;  %v732_v41 = vld [vmem:[#allocation7 + $0x8] sm:$0xff]  }
  0x43   :  { %620 = vmatpush3.bf16.msra.mxu0 %v705_v11  ;;  %v722_v28 = vld [vmem:[#allocation5 + $0xb0] sm:$0xff]   ;;  %v726_v32 = vld [vmem:[#allocation5 + $0xb8] sm:$0xff]   ;;  %v735_v44 = vld [vmem:[#allocation7 + $0x20] sm:$0xff]  }
  0x44   :  { %642 = vmatpush3.bf16.msra.mxu1 %v706_v12  ;;  %621 = vmatprep.subr.bf16.mxu0 %v707_v13  ;;  %v68_v33 = vld [vmem:[#allocation3] sm:$0xff]  ;;  %v69_v34 = vld [vmem:[#allocation3 + $0x8] sm:$0xff]  ;;  %v736_v45 = vld [vmem:[#allocation7 + $0x28] sm:$0xff]  }
  0x45   :  { %643 = vmatprep.subr.bf16.mxu1 %v708_v14  ;;  %v568_v35 = vcombine.low %v68_v33, %v68_v33  ;;  %v569_v36 = vcombine.high %v68_v33, %v68_v33  ;;  %v570_v37 = vcombine.low %v69_v34, %v69_v34  ;;  %v571_v38 = vcombine.high %v69_v34, %v69_v34  ;;  %v733_v42 = vld [vmem:[#allocation7 + $0x10] sm:$0xff]   ;;  %v734_v43 = vld [vmem:[#allocation7 + $0x18] sm:$0xff]   ;;  %v567_v50 = vld [vmem:[%s915_s2] ss:$0 sm:$0xff] }
  0x46   :  { %v737_v46 = vld [vmem:[#allocation7 + $0x30] sm:$0xff]   ;;  %v738_v47 = vld [vmem:[#allocation7 + $0x38] sm:$0xff]   ;;  %v604_v63 = vld [vmem:[%s917_s4] ss:$0 sm:$0xff] }
  0x47   :  { %622 = vmatpush3.bf16.msra.mxu0 %v709_v15  ;;  %379 = vmatprep.mubr.bf16.mxu0 %v569_v36  ;;  %v613_v4 = vld [vmem:[%s918_s5] ss:$0 sm:$0xff] }
  0x48   :  { %644 = vmatpush3.bf16.msra.mxu1 %v710_v16  ;;  %623 = vmatprep.subr.bf16.mxu0 %v711_v17  ;;  %v614_v8 = vld [vmem:[#allocation2] ss:$0 sm:$0xff] }
  0x49   :  { %645 = vmatprep.subr.bf16.mxu1 %v712_v18  ;;  %419 = vmatprep.mubr.bf16.mxu1 %v571_v38 }
  0x4b   :  { %624 = vmatpush3.bf16.msra.mxu0 %v713_v19 }
  0x4c   :  { %646 = vmatpush3.bf16.msra.mxu1 %v714_v20  ;;  %625 = vmatprep.subr.bf16.mxu0 %v715_v21 }
  0x4d   :  { %647 = vmatprep.subr.bf16.mxu1 %v716_v22 }
  0x4f   :  { %626 = vmatpush3.bf16.msra.mxu0 %v717_v23 }
  0x50   :  { %648 = vmatpush3.bf16.msra.mxu1 %v718_v24  ;;  %627 = vmatprep.subr.bf16.mxu0 %v719_v25 }
  0x51   :  { %649 = vmatprep.subr.bf16.mxu1 %v720_v26 }
  0x53   :  { %628 = vmatpush3.bf16.msra.mxu0 %v721_v27 }
  0x54   :  { %650 = vmatpush3.bf16.msra.mxu1 %v722_v28  ;;  %629 = vmatprep.subr.bf16.mxu0 %v723_v29 }
  0x55   :  { %651 = vmatprep.subr.bf16.mxu1 %v724_v30 }
  0x57   :  { %630 = vmatpush3.bf16.msra.mxu0 %v725_v31 }
  0x58   :  { %652 = vmatpush3.bf16.msra.mxu1 %v726_v32  ;;  %668 = vmatprep.subr.bf16.mxu0 %v814_v40 }
  0x5a   :  { %380 = vmatmul.mubr.bf16.vlgmr.msra.gmra.mrb[0].mxu0 %v568_v35 }
  0x5b   :  { %420 = vmatmul.mubr.bf16.vlgmr.msra.gmra.mrb[0].mxu1 %v570_v37  ;;  %669 = vmatpush3.bf16.msra.mxu0 %v731_v39 }
  0x5c   :  { %670 = vmatprep.subr.bf16.mxu0 %v814_v40  ;;  %684 = vmatprep.mubr.msk.bf16.mxu0 %vm815_vm0, %v814_v40 }
  0x5f   :  { %671 = vmatpush3.bf16.msra.mxu0 %v732_v41 }
  0x60   :  { %672 = vmatprep.subr.bf16.mxu0 %v814_v40 }
  0x63   :  { %673 = vmatpush3.bf16.msra.mxu0 %v733_v42 }
  0x64   :  { %674 = vmatprep.subr.bf16.mxu0 %v814_v40 }
  0x67   :  { %675 = vmatpush3.bf16.msra.mxu0 %v734_v43 }
  0x68   :  { %676 = vmatprep.subr.bf16.mxu0 %v814_v40 }
  0x6b   :  { %677 = vmatpush3.bf16.msra.mxu0 %v735_v44 }
  0x6c   :  { %678 = vmatprep.subr.bf16.mxu0 %v814_v40 }
  0x6f   :  { %679 = vmatpush3.bf16.msra.mxu0 %v736_v45 }
  0x70   :  { %680 = vmatprep.subr.bf16.mxu0 %v814_v40 }
  0x73   :  { %681 = vmatpush3.bf16.msra.mxu0 %v737_v46 }
  0x74   :  { %682 = vmatprep.subr.bf16.mxu0 %v814_v40 }
  0x77   :  { %683 = vmatpush3.bf16.msra.mxu0 %v738_v47 }
 0x12d   :  { %v631_v48 = vpop.f32.mrb[0].mxu0 }
 0x12e   :  { %v653_v49 = vpop.f32.mrb[0].mxu1  ;;  %v632_v51 = vpop.f32.mrb[1].mxu0 }
 0x12f   :  { %v654_v52 = vpop.f32.mrb[1].mxu1  ;;  %v633_v53 = vadd.f32 %v632_v51, %v631_v48  ;;  %v634_v55 = vpop.f32.mrb[2].mxu0 }
 0x130   :  { %v655_v54 = vadd.f32 %v654_v52, %v653_v49  ;;  %v656_v56 = vpop.f32.mrb[2].mxu1  ;;  %v635_v57 = vpop.f32.mrb[3].mxu0 }
 0x131   :  { %v657_v58 = vpop.f32.mrb[3].mxu1  ;;  %v382_v59 = vadd.f32 %v633_v53, %v567_v50 }
 0x133   :  { %v422_v60 = vadd.f32 %v655_v54, %v382_v59 }
 0x135   :  { %v427_v61 = vmax.f32 %v422_v60, 0.0 }
 0x137   :  { %v428_v62 = vpack.c.bf16 %v427_v61, %v427_v61 }
 0x139   :  { %685 = vmatmul.mubr.bf16.vlgmr.msra.gmra.mrb[4].mxu0 %v428_v62 }
 0x20c   :  { %v534_v0 = vpop.f32.mrb[4].mxu0 }
 0x20d   :  { %v535_v1 = vadd.f32 %v604_v63, %v534_v0  ;;  %v686_v2 = vpop.f32.mrb[5].mxu0 }
 0x20e   :  { %v537_v3 = vpop.f32.mrb[6].mxu0 }
 0x20f   :  { %v540_v5 = vmax.f32 %v535_v1, 0.0  ;;  %v687_v6 = vpop.f32.mrb[7].mxu0 }
 0x211   :  { %v548_v7 = vmul.f32 %v613_v4, %v540_v5 }
 0x213   :  { %549 = vadd.xlane.f32.xlu0 %v548_v7 }
 0x2a0   :  { %v550_v9 = vpop.xlane.xlu0 %549 }
 0x2a1   :  { %v558_v10 = vadd.f32 %v614_v8, %v550_v9 }
 0x2a3   :  { %560 = vst.msk [vmem:[%s920_s7] sm:$0xff] %vm559_vm1, %v558_v10 }
 0x2a4   :  { %565 = vsyncpa [#allocation4], 1 }
 0x2a5   :  { %566 = vsyncpa [#allocation6], 1 }

</bundles_post_ra>
